<compile_context>
chip_gen: v7x
topology: tpu7x:2x2x1
jax: 0.10.0
libtpu: 0.0.40
codegen_flags: <defaults>
</compile_context>

<pallas_src>
import jax
import jax.numpy as jnp
from jax import lax
from jax.experimental import pallas as pl
from jax.experimental.pallas import tpu as pltpu


def graphconv_kernel(adj_ref, feat_ref, mask_row_ref, mask_col_ref,
                     w_ref, b_ref, out_ref):
    # adj_ref:      (GPB, N, N)  bf16  (adj[g, v, u] = 1 iff edge u -> v)
    # feat_ref:     (GPB, N, F)  f32
    # mask_row_ref: (GPB, 1, N)  f32
    # mask_col_ref: (GPB, N, 1)  f32
    # w_ref:        (2F, O)      f32
    # b_ref:        (1, O)       f32
    # out_ref:      (1, N, GPB*O) f32   (lane-dense output slab)
    gpb = adj_ref.shape[0]
    F = feat_ref.shape[-1]

    w = w_ref[...]
    w_top = w[:F, :]          # applied to aggregated features
    w_bot = w[F:, :]          # applied to the jump (original) features
    b = b_ref[...]

    outs = []
    for g in range(gpb):                       # static unroll over graphs in block
        adj = adj_ref[g]                       # (N, N) bf16
        feat = feat_ref[g]                     # (N, F) f32
        mask_row = mask_row_ref[g]             # (1, N) f32
        mask_col = mask_col_ref[g]             # (N, 1) f32

        # masked in-degree as a VPU/XLU row reduction (not an MXU matvec).
        masked_deg = jnp.sum(adj * mask_row, axis=-1, keepdims=True)       # (N, 1) f32
        norm = jnp.where(masked_deg == 0.0, 1.0, lax.rsqrt(masked_deg))    # (N, 1)

        # fold norm * mask into one per-node scale, then one broadcast multiply.
        scale = norm * mask_col                                            # (N, 1)
        h = (feat * scale).astype(jnp.bfloat16)                            # (N, F) bf16

        # graph aggregation on the MXU in bf16, f32 accumulation.
        agg = jnp.dot(adj, h, preferred_element_type=jnp.float32)          # (N, F) f32
        rst = agg * norm                                                   # (N, F)

        # jump connection: concat([rst, feat], -1) @ W == rst@W_top + feat@W_bot
        out_g = (jnp.dot(rst, w_top, preferred_element_type=jnp.float32)
                 + jnp.dot(feat, w_bot, preferred_element_type=jnp.float32)
                 + b)                                                      # (N, O)
        outs.append(out_g)

    # single lane-dense store: (N, GPB*O), GPB*O is a multiple of 128.
    out_ref[0] = jnp.concatenate(outs, axis=-1).astype(out_ref.dtype)


def graph_conv(adj, feat, mask, weight, bias, *, graphs_per_block=4):
    """Batched Pallas GraphConv forward.

    adj:  (B, N, N) 0/1, adj[b, v, u] = 1 iff edge u -> v in graph b
    feat: (B, N, F)
    mask: (B, N)    0/1 node mask
    weight: (2F, O), bias: (O,)
    returns (B, N, O) f32.
    """
    B, N, F = feat.shape
    O = weight.shape[-1]
    assert adj.shape == (B, N, N)
    gpb = graphs_per_block
    assert B % gpb == 0, "batch must be divisible by graphs_per_block"
    nb = B // gpb

    adj_bf16 = adj.astype(jnp.bfloat16)                  # 0/1 exact in bf16
    feat_f32 = feat.astype(jnp.float32)
    mask_f = mask.reshape(B, N).astype(jnp.float32)
    mask_row = mask_f.reshape(B, 1, N)                   # for the degree reduction
    mask_col = mask_f.reshape(B, N, 1)                   # for the feature scaling
    w = weight.astype(jnp.float32)
    b = bias.reshape(1, O).astype(jnp.float32)

    out_slab = pl.pallas_call(
        graphconv_kernel,
        out_shape=jax.ShapeDtypeStruct((nb, N, gpb * O), jnp.float32),
        grid=(nb,),
        in_specs=[
            pl.BlockSpec((gpb, N, N), lambda i: (i, 0, 0)),
            pl.BlockSpec((gpb, N, F), lambda i: (i, 0, 0)),
            pl.BlockSpec((gpb, 1, N), lambda i: (i, 0, 0)),
            pl.BlockSpec((gpb, N, 1), lambda i: (i, 0, 0)),
            pl.BlockSpec((2 * F, O), lambda i: (0, 0)),
            pl.BlockSpec((1, O), lambda i: (0, 0)),
        ],
        out_specs=pl.BlockSpec((1, N, gpb * O), lambda i: (i, 0, 0)),
        compiler_params=pltpu.CompilerParams(
            dimension_semantics=("parallel",)),   # megacore sharding on v7x
    )(adj_bf16, feat_f32, mask_row, mask_col, w, b)

    # (nb, N, gpb*O) -> (B, N, O): pure layout plumbing in the XLA wrapper.
    out = out_slab.reshape(nb, N, gpb, O).transpose(0, 2, 1, 3).reshape(B, N, O)
    return out


def graph_conv_ref(adj, feat, mask, weight, bias, agg_dtype=jnp.float32):
    """Pure-JAX batched reference (mirrors the PyTorch/DGL mask path).

    agg_dtype=jnp.bfloat16 mirrors the kernel's bf16 aggregation numerics.
    """
    mask_f = mask.astype(jnp.float32)                                  # (B, N)
    masked_deg = jnp.einsum('bvu,bu->bv', adj.astype(jnp.float32),
                            mask_f)[..., None]                         # (B, N, 1)
    norm = jnp.where(masked_deg == 0.0, 1.0, masked_deg ** -0.5)
    h = feat.astype(jnp.float32) * norm * mask_f[..., None]            # (B, N, F)
    agg = jnp.einsum('bvu,buf->bvf',
                     adj.astype(agg_dtype), h.astype(agg_dtype),
                     preferred_element_type=jnp.float32)
    rst = agg * norm
    rst = jnp.concatenate([rst, feat.astype(jnp.float32)], axis=-1)
    return rst @ weight.astype(jnp.float32) + bias.astype(jnp.float32)


if __name__ == "__main__":
    B, N, in_feats, out_feats = 8, 32, 16, 32   # 4 graphs per block -> 128-lane output

    key = jax.random.PRNGKey(0)
    k_adj, k_feat, k_mask, k_w = jax.random.split(key, 4)

    # deterministic random directed graphs (dense adjacency, adj[b, v, u] = edge u->v)
    adj = (jax.random.uniform(k_adj, (B, N, N)) < 0.3).astype(jnp.float32)
    feat = jax.random.normal(k_feat, (B, N, in_feats), dtype=jnp.float32)
    mask = (jax.random.uniform(k_mask, (B, N)) < 0.8).astype(jnp.float32)

    # parameters: xavier_uniform_ weight (2*in_feats, out_feats), zero bias
    fan_in, fan_out = 2 * in_feats, out_feats
    bound = (6.0 / (fan_in + fan_out)) ** 0.5
    weight = jax.random.uniform(k_w, (2 * in_feats, out_feats),
                                minval=-bound, maxval=bound, dtype=jnp.float32)
    bias = jnp.zeros((out_feats,), dtype=jnp.float32)

    out = graph_conv(adj, feat, mask, weight, bias, graphs_per_block=4)
    out = jax.block_until_ready(out)
    assert out.shape == (B, N, out_feats)

    # tight check vs a reference that mirrors the kernel's bf16 aggregation
    ref_bf16 = graph_conv_ref(adj, feat, mask, weight, bias, agg_dtype=jnp.bfloat16)
    assert jnp.allclose(out, ref_bf16, atol=5e-3, rtol=5e-3), \
        "mismatch vs bf16-matched reference"

    # sanity check vs the full-f32 module semantics (bf16-aggregation tolerance)
    ref_f32 = graph_conv_ref(adj, feat, mask, weight, bias, agg_dtype=jnp.float32)
    assert jnp.allclose(out, ref_f32, atol=5e-2, rtol=5e-2), \
        "mismatch vs f32 module reference"

    print("KERNEL_OK")
</pallas_src>

<mosaic_0001>
module attributes {stable_mosaic.version = 11 : i64} {
  func.func @graphconv_kernel(%arg0: i32, %arg1: memref<4x32x32xbf16, #tpu.memory_space<vmem>>, %arg2: memref<4x32x16xf32, #tpu.memory_space<vmem>>, %arg3: memref<4x1x32xf32, #tpu.memory_space<vmem>>, %arg4: memref<4x32x1xf32, #tpu.memory_space<vmem>>, %arg5: memref<32x32xf32, #tpu.memory_space<vmem>>, %arg6: memref<1x32xf32, #tpu.memory_space<vmem>>, %arg7: memref<1x32x128xf32, #tpu.memory_space<vmem>>) attributes {dimension_semantics = [#tpu.dimension_semantics<parallel>], iteration_bounds = array<i64: 2>, scalar_prefetch = 0 : i64, scratch_operands = 0 : i64, tpu.core_type = #tpu.core_type<tc>, window_params = [{transform_indices = @transform_0, window_bounds = array<i64: 4, 32, 32>}, {transform_indices = @transform_1, window_bounds = array<i64: 4, 32, 16>}, {transform_indices = @transform_2, window_bounds = array<i64: 4, 1, 32>}, {transform_indices = @transform_3, window_bounds = array<i64: 4, 32, 1>}, {pipeline_mode = #tpu.pipeline_mode<synchronous>, transform_indices = @transform_4, window_bounds = array<i64: 32, 32>}, {pipeline_mode = #tpu.pipeline_mode<synchronous>, transform_indices = @transform_5, window_bounds = array<i64: 1, 32>}, {transform_indices = @transform_6, window_bounds = array<i64: 1, 32, 128>}]} {
    %c0 = arith.constant 0 : index
    %c0_0 = arith.constant 0 : index
    %0 = vector.load %arg5[%c0, %c0_0] : memref<32x32xf32, #tpu.memory_space<vmem>>, vector<32x32xf32>
    %1 = vector.extract_strided_slice %0 {offsets = [0, 0], sizes = [16, 32], strides = [1, 1]} : vector<32x32xf32> to vector<16x32xf32>
    %2 = vector.extract_strided_slice %0 {offsets = [16, 0], sizes = [16, 32], strides = [1, 1]} : vector<32x32xf32> to vector<16x32xf32>
    %c0_1 = arith.constant 0 : index
    %c0_2 = arith.constant 0 : index
    %3 = vector.load %arg6[%c0_1, %c0_2] : memref<1x32xf32, #tpu.memory_space<vmem>>, vector<1x32xf32>
    %c0_3 = arith.constant 0 : index
    %c0_4 = arith.constant 0 : index
    %c0_5 = arith.constant 0 : index
    %4 = vector.load %arg1[%c0_3, %c0_4, %c0_5] : memref<4x32x32xbf16, #tpu.memory_space<vmem>>, vector<1x32x32xbf16>
    %5 = vector.shape_cast %4 : vector<1x32x32xbf16> to vector<32x32xbf16>
    %c0_6 = arith.constant 0 : index
    %c0_7 = arith.constant 0 : index
    %c0_8 = arith.constant 0 : index
    %6 = vector.load %arg2[%c0_6, %c0_7, %c0_8] : memref<4x32x16xf32, #tpu.memory_space<vmem>>, vector<1x32x16xf32>
    %7 = vector.shape_cast %6 : vector<1x32x16xf32> to vector<32x16xf32>
    %c0_9 = arith.constant 0 : index
    %c0_10 = arith.constant 0 : index
    %c0_11 = arith.constant 0 : index
    %8 = vector.load %arg3[%c0_9, %c0_10, %c0_11] : memref<4x1x32xf32, #tpu.memory_space<vmem>>, vector<1x1x32xf32>
    %9 = vector.shape_cast %8 : vector<1x1x32xf32> to vector<1x32xf32>
    %c0_12 = arith.constant 0 : index
    %c0_13 = arith.constant 0 : index
    %c0_14 = arith.constant 0 : index
    %10 = vector.load %arg4[%c0_12, %c0_13, %c0_14] : memref<4x32x1xf32, #tpu.memory_space<vmem>>, vector<1x32x1xf32>
    %11 = vector.shape_cast %10 : vector<1x32x1xf32> to vector<32x1xf32>
    %12 = arith.extf %5 : vector<32x32xbf16> to vector<32x32xf32>
    %13 = vector.broadcast %9 : vector<1x32xf32> to vector<32x32xf32>
    %14 = arith.mulf %12, %13 : vector<32x32xf32>
    %cst = arith.constant dense<0.000000e+00> : vector<32xf32>
    %15 = vector.multi_reduction <add>, %14, %cst [1] : vector<32x32xf32> to vector<32xf32>
    %16 = vector.shape_cast %15 : vector<32xf32> to vector<32x1xf32>
    %cst_15 = arith.constant 0.000000e+00 : f32
    %17 = vector.broadcast %cst_15 : f32 to vector<32x1xf32>
    %18 = arith.cmpf oeq, %16, %17 : vector<32x1xf32>
    %19 = math.rsqrt %16 : vector<32x1xf32>
    %cst_16 = arith.constant 1.000000e+00 : f32
    %20 = vector.broadcast %cst_16 : f32 to vector<32x1xf32>
    %21 = arith.select %18, %20, %19 : vector<32x1xi1>, vector<32x1xf32>
    %22 = arith.mulf %21, %11 : vector<32x1xf32>
    %23 = vector.broadcast %22 : vector<32x1xf32> to vector<32x16xf32>
    %24 = arith.mulf %7, %23 : vector<32x16xf32>
    %25 = arith.truncf %24 : vector<32x16xf32> to vector<32x16xbf16>
    %cst_17 = arith.constant dense<0.000000e+00> : vector<32x16xf32>
    %26 = tpu.matmul %5, %25, %cst_17 {dimension_numbers = #tpu.dot_dimension_numbers<[1], [0], [0], [1], [0, 0, 1, 1], [], []>} : vector<32x32xbf16>, vector<32x16xbf16>, vector<32x16xf32> -> vector<32x16xf32>
    %27 = vector.broadcast %21 : vector<32x1xf32> to vector<32x16xf32>
    %28 = arith.mulf %26, %27 : vector<32x16xf32>
    %cst_18 = arith.constant dense<0.000000e+00> : vector<32x32xf32>
    %29 = tpu.matmul %28, %1, %cst_18 {dimension_numbers = #tpu.dot_dimension_numbers<[1], [0], [0], [1], [0, 0, 1, 1], [], []>} : vector<32x16xf32>, vector<16x32xf32>, vector<32x32xf32> -> vector<32x32xf32>
    %cst_19 = arith.constant dense<0.000000e+00> : vector<32x32xf32>
    %30 = tpu.matmul %7, %2, %cst_19 {dimension_numbers = #tpu.dot_dimension_numbers<[1], [0], [0], [1], [0, 0, 1, 1], [], []>} : vector<32x16xf32>, vector<16x32xf32>, vector<32x32xf32> -> vector<32x32xf32>
    %31 = arith.addf %29, %30 : vector<32x32xf32>
    %32 = vector.broadcast %3 : vector<1x32xf32> to vector<32x32xf32>
    %33 = arith.addf %31, %32 : vector<32x32xf32>
    %c1 = arith.constant 1 : index
    %c0_20 = arith.constant 0 : index
    %c0_21 = arith.constant 0 : index
    %34 = vector.load %arg1[%c1, %c0_20, %c0_21] : memref<4x32x32xbf16, #tpu.memory_space<vmem>>, vector<1x32x32xbf16>
    %35 = vector.shape_cast %34 : vector<1x32x32xbf16> to vector<32x32xbf16>
    %c1_22 = arith.constant 1 : index
    %c0_23 = arith.constant 0 : index
    %c0_24 = arith.constant 0 : index
    %36 = vector.load %arg2[%c1_22, %c0_23, %c0_24] : memref<4x32x16xf32, #tpu.memory_space<vmem>>, vector<1x32x16xf32>
    %37 = vector.shape_cast %36 : vector<1x32x16xf32> to vector<32x16xf32>
    %c1_25 = arith.constant 1 : index
    %c0_26 = arith.constant 0 : index
    %c0_27 = arith.constant 0 : index
    %38 = vector.load %arg3[%c1_25, %c0_26, %c0_27] : memref<4x1x32xf32, #tpu.memory_space<vmem>>, vector<1x1x32xf32>
    %39 = vector.shape_cast %38 : vector<1x1x32xf32> to vector<1x32xf32>
    %c1_28 = arith.constant 1 : index
    %c0_29 = arith.constant 0 : index
    %c0_30 = arith.constant 0 : index
    %40 = vector.load %arg4[%c1_28, %c0_29, %c0_30] : memref<4x32x1xf32, #tpu.memory_space<vmem>>, vector<1x32x1xf32>
    %41 = vector.shape_cast %40 : vector<1x32x1xf32> to vector<32x1xf32>
    %42 = arith.extf %35 : vector<32x32xbf16> to vector<32x32xf32>
    %43 = vector.broadcast %39 : vector<1x32xf32> to vector<32x32xf32>
    %44 = arith.mulf %42, %43 : vector<32x32xf32>
    %cst_31 = arith.constant dense<0.000000e+00> : vector<32xf32>
    %45 = vector.multi_reduction <add>, %44, %cst_31 [1] : vector<32x32xf32> to vector<32xf32>
    %46 = vector.shape_cast %45 : vector<32xf32> to vector<32x1xf32>
    %cst_32 = arith.constant 0.000000e+00 : f32
    %47 = vector.broadcast %cst_32 : f32 to vector<32x1xf32>
    %48 = arith.cmpf oeq, %46, %47 : vector<32x1xf32>
    %49 = math.rsqrt %46 : vector<32x1xf32>
    %cst_33 = arith.constant 1.000000e+00 : f32
    %50 = vector.broadcast %cst_33 : f32 to vector<32x1xf32>
    %51 = arith.select %48, %50, %49 : vector<32x1xi1>, vector<32x1xf32>
    %52 = arith.mulf %51, %41 : vector<32x1xf32>
    %53 = vector.broadcast %52 : vector<32x1xf32> to vector<32x16xf32>
    %54 = arith.mulf %37, %53 : vector<32x16xf32>
    %55 = arith.truncf %54 : vector<32x16xf32> to vector<32x16xbf16>
    %cst_34 = arith.constant dense<0.000000e+00> : vector<32x16xf32>
    %56 = tpu.matmul %35, %55, %cst_34 {dimension_numbers = #tpu.dot_dimension_numbers<[1], [0], [0], [1], [0, 0, 1, 1], [], []>} : vector<32x32xbf16>, vector<32x16xbf16>, vector<32x16xf32> -> vector<32x16xf32>
    %57 = vector.broadcast %51 : vector<32x1xf32> to vector<32x16xf32>
    %58 = arith.mulf %56, %57 : vector<32x16xf32>
    %cst_35 = arith.constant dense<0.000000e+00> : vector<32x32xf32>
    %59 = tpu.matmul %58, %1, %cst_35 {dimension_numbers = #tpu.dot_dimension_numbers<[1], [0], [0], [1], [0, 0, 1, 1], [], []>} : vector<32x16xf32>, vector<16x32xf32>, vector<32x32xf32> -> vector<32x32xf32>
    %cst_36 = arith.constant dense<0.000000e+00> : vector<32x32xf32>
    %60 = tpu.matmul %37, %2, %cst_36 {dimension_numbers = #tpu.dot_dimension_numbers<[1], [0], [0], [1], [0, 0, 1, 1], [], []>} : vector<32x16xf32>, vector<16x32xf32>, vector<32x32xf32> -> vector<32x32xf32>
    %61 = arith.addf %59, %60 : vector<32x32xf32>
    %62 = vector.broadcast %3 : vector<1x32xf32> to vector<32x32xf32>
    %63 = arith.addf %61, %62 : vector<32x32xf32>
    %c2 = arith.constant 2 : index
    %c0_37 = arith.constant 0 : index
    %c0_38 = arith.constant 0 : index
    %64 = vector.load %arg1[%c2, %c0_37, %c0_38] : memref<4x32x32xbf16, #tpu.memory_space<vmem>>, vector<1x32x32xbf16>
    %65 = vector.shape_cast %64 : vector<1x32x32xbf16> to vector<32x32xbf16>
    %c2_39 = arith.constant 2 : index
    %c0_40 = arith.constant 0 : index
    %c0_41 = arith.constant 0 : index
    %66 = vector.load %arg2[%c2_39, %c0_40, %c0_41] : memref<4x32x16xf32, #tpu.memory_space<vmem>>, vector<1x32x16xf32>
    %67 = vector.shape_cast %66 : vector<1x32x16xf32> to vector<32x16xf32>
    %c2_42 = arith.constant 2 : index
    %c0_43 = arith.constant 0 : index
    %c0_44 = arith.constant 0 : index
    %68 = vector.load %arg3[%c2_42, %c0_43, %c0_44] : memref<4x1x32xf32, #tpu.memory_space<vmem>>, vector<1x1x32xf32>
    %69 = vector.shape_cast %68 : vector<1x1x32xf32> to vector<1x32xf32>
    %c2_45 = arith.constant 2 : index
    %c0_46 = arith.constant 0 : index
    %c0_47 = arith.constant 0 : index
    %70 = vector.load %arg4[%c2_45, %c0_46, %c0_47] : memref<4x32x1xf32, #tpu.memory_space<vmem>>, vector<1x32x1xf32>
    %71 = vector.shape_cast %70 : vector<1x32x1xf32> to vector<32x1xf32>
    %72 = arith.extf %65 : vector<32x32xbf16> to vector<32x32xf32>
    %73 = vector.broadcast %69 : vector<1x32xf32> to vector<32x32xf32>
    %74 = arith.mulf %72, %73 : vector<32x32xf32>
    %cst_48 = arith.constant dense<0.000000e+00> : vector<32xf32>
    %75 = vector.multi_reduction <add>, %74, %cst_48 [1] : vector<32x32xf32> to vector<32xf32>
    %76 = vector.shape_cast %75 : vector<32xf32> to vector<32x1xf32>
    %cst_49 = arith.constant 0.000000e+00 : f32
    %77 = vector.broadcast %cst_49 : f32 to vector<32x1xf32>
    %78 = arith.cmpf oeq, %76, %77 : vector<32x1xf32>
    %79 = math.rsqrt %76 : vector<32x1xf32>
    %cst_50 = arith.constant 1.000000e+00 : f32
    %80 = vector.broadcast %cst_50 : f32 to vector<32x1xf32>
    %81 = arith.select %78, %80, %79 : vector<32x1xi1>, vector<32x1xf32>
    %82 = arith.mulf %81, %71 : vector<32x1xf32>
    %83 = vector.broadcast %82 : vector<32x1xf32> to vector<32x16xf32>
    %84 = arith.mulf %67, %83 : vector<32x16xf32>
    %85 = arith.truncf %84 : vector<32x16xf32> to vector<32x16xbf16>
    %cst_51 = arith.constant dense<0.000000e+00> : vector<32x16xf32>
    %86 = tpu.matmul %65, %85, %cst_51 {dimension_numbers = #tpu.dot_dimension_numbers<[1], [0], [0], [1], [0, 0, 1, 1], [], []>} : vector<32x32xbf16>, vector<32x16xbf16>, vector<32x16xf32> -> vector<32x16xf32>
    %87 = vector.broadcast %81 : vector<32x1xf32> to vector<32x16xf32>
    %88 = arith.mulf %86, %87 : vector<32x16xf32>
    %cst_52 = arith.constant dense<0.000000e+00> : vector<32x32xf32>
    %89 = tpu.matmul %88, %1, %cst_52 {dimension_numbers = #tpu.dot_dimension_numbers<[1], [0], [0], [1], [0, 0, 1, 1], [], []>} : vector<32x16xf32>, vector<16x32xf32>, vector<32x32xf32> -> vector<32x32xf32>
    %cst_53 = arith.constant dense<0.000000e+00> : vector<32x32xf32>
    %90 = tpu.matmul %67, %2, %cst_53 {dimension_numbers = #tpu.dot_dimension_numbers<[1], [0], [0], [1], [0, 0, 1, 1], [], []>} : vector<32x16xf32>, vector<16x32xf32>, vector<32x32xf32> -> vector<32x32xf32>
    %91 = arith.addf %89, %90 : vector<32x32xf32>
    %92 = vector.broadcast %3 : vector<1x32xf32> to vector<32x32xf32>
    %93 = arith.addf %91, %92 : vector<32x32xf32>
    %c3 = arith.constant 3 : index
    %c0_54 = arith.constant 0 : index
    %c0_55 = arith.constant 0 : index
    %94 = vector.load %arg1[%c3, %c0_54, %c0_55] : memref<4x32x32xbf16, #tpu.memory_space<vmem>>, vector<1x32x32xbf16>
    %95 = vector.shape_cast %94 : vector<1x32x32xbf16> to vector<32x32xbf16>
    %c3_56 = arith.constant 3 : index
    %c0_57 = arith.constant 0 : index
    %c0_58 = arith.constant 0 : index
    %96 = vector.load %arg2[%c3_56, %c0_57, %c0_58] : memref<4x32x16xf32, #tpu.memory_space<vmem>>, vector<1x32x16xf32>
    %97 = vector.shape_cast %96 : vector<1x32x16xf32> to vector<32x16xf32>
    %c3_59 = arith.constant 3 : index
    %c0_60 = arith.constant 0 : index
    %c0_61 = arith.constant 0 : index
    %98 = vector.load %arg3[%c3_59, %c0_60, %c0_61] : memref<4x1x32xf32, #tpu.memory_space<vmem>>, vector<1x1x32xf32>
    %99 = vector.shape_cast %98 : vector<1x1x32xf32> to vector<1x32xf32>
    %c3_62 = arith.constant 3 : index
    %c0_63 = arith.constant 0 : index
    %c0_64 = arith.constant 0 : index
    %100 = vector.load %arg4[%c3_62, %c0_63, %c0_64] : memref<4x32x1xf32, #tpu.memory_space<vmem>>, vector<1x32x1xf32>
    %101 = vector.shape_cast %100 : vector<1x32x1xf32> to vector<32x1xf32>
    %102 = arith.extf %95 : vector<32x32xbf16> to vector<32x32xf32>
    %103 = vector.broadcast %99 : vector<1x32xf32> to vector<32x32xf32>
    %104 = arith.mulf %102, %103 : vector<32x32xf32>
    %cst_65 = arith.constant dense<0.000000e+00> : vector<32xf32>
    %105 = vector.multi_reduction <add>, %104, %cst_65 [1] : vector<32x32xf32> to vector<32xf32>
    %106 = vector.shape_cast %105 : vector<32xf32> to vector<32x1xf32>
    %cst_66 = arith.constant 0.000000e+00 : f32
    %107 = vector.broadcast %cst_66 : f32 to vector<32x1xf32>
    %108 = arith.cmpf oeq, %106, %107 : vector<32x1xf32>
    %109 = math.rsqrt %106 : vector<32x1xf32>
    %cst_67 = arith.constant 1.000000e+00 : f32
    %110 = vector.broadcast %cst_67 : f32 to vector<32x1xf32>
    %111 = arith.select %108, %110, %109 : vector<32x1xi1>, vector<32x1xf32>
    %112 = arith.mulf %111, %101 : vector<32x1xf32>
    %113 = vector.broadcast %112 : vector<32x1xf32> to vector<32x16xf32>
    %114 = arith.mulf %97, %113 : vector<32x16xf32>
    %115 = arith.truncf %114 : vector<32x16xf32> to vector<32x16xbf16>
    %cst_68 = arith.constant dense<0.000000e+00> : vector<32x16xf32>
    %116 = tpu.matmul %95, %115, %cst_68 {dimension_numbers = #tpu.dot_dimension_numbers<[1], [0], [0], [1], [0, 0, 1, 1], [], []>} : vector<32x32xbf16>, vector<32x16xbf16>, vector<32x16xf32> -> vector<32x16xf32>
    %117 = vector.broadcast %111 : vector<32x1xf32> to vector<32x16xf32>
    %118 = arith.mulf %116, %117 : vector<32x16xf32>
    %cst_69 = arith.constant dense<0.000000e+00> : vector<32x32xf32>
    %119 = tpu.matmul %118, %1, %cst_69 {dimension_numbers = #tpu.dot_dimension_numbers<[1], [0], [0], [1], [0, 0, 1, 1], [], []>} : vector<32x16xf32>, vector<16x32xf32>, vector<32x32xf32> -> vector<32x32xf32>
    %cst_70 = arith.constant dense<0.000000e+00> : vector<32x32xf32>
    %120 = tpu.matmul %97, %2, %cst_70 {dimension_numbers = #tpu.dot_dimension_numbers<[1], [0], [0], [1], [0, 0, 1, 1], [], []>} : vector<32x16xf32>, vector<16x32xf32>, vector<32x32xf32> -> vector<32x32xf32>
    %121 = arith.addf %119, %120 : vector<32x32xf32>
    %122 = vector.broadcast %3 : vector<1x32xf32> to vector<32x32xf32>
    %123 = arith.addf %121, %122 : vector<32x32xf32>
    %124 = tpu.concatenate %33, %63, %93, %123 in 1 : vector<32x32xf32>, vector<32x32xf32>, vector<32x32xf32>, vector<32x32xf32> -> vector<32x128xf32>
    %c0_71 = arith.constant 0 : index
    %c0_72 = arith.constant 0 : index
    %c0_73 = arith.constant 0 : index
    %125 = vector.load %arg7[%c0_71, %c0_72, %c0_73] : memref<1x32x128xf32, #tpu.memory_space<vmem>>, vector<1x32x128xf32>
    %126 = vector.shape_cast %125 : vector<1x32x128xf32> to vector<32x128xf32>
    %127 = vector.shape_cast %124 : vector<32x128xf32> to vector<1x32x128xf32>
    tpu.vector_store %arg7[%c0_71, %c0_72, %c0_73], %127 {strides = array<i32>} : memref<1x32x128xf32, #tpu.memory_space<vmem>>, vector<1x32x128xf32>,
    return
  }
  func.func @transform_0(%arg0: i32) -> (i32, i32, i32) {
    %c0_i32 = arith.constant 0 : i32
    %c0_i32_0 = arith.constant 0 : i32
    %c0_i32_1 = arith.constant 0 : i32
    return %arg0, %c0_i32, %c0_i32_0 : i32, i32, i32
  }
  func.func @transform_1(%arg0: i32) -> (i32, i32, i32) {
    %c0_i32 = arith.constant 0 : i32
    %c0_i32_0 = arith.constant 0 : i32
    %c0_i32_1 = arith.constant 0 : i32
    return %arg0, %c0_i32, %c0_i32_0 : i32, i32, i32
  }
  func.func @transform_2(%arg0: i32) -> (i32, i32, i32) {
    %c0_i32 = arith.constant 0 : i32
    %c0_i32_0 = arith.constant 0 : i32
    %c0_i32_1 = arith.constant 0 : i32
    return %arg0, %c0_i32, %c0_i32_0 : i32, i32, i32
  }
  func.func @transform_3(%arg0: i32) -> (i32, i32, i32) {
    %c0_i32 = arith.constant 0 : i32
    %c0_i32_0 = arith.constant 0 : i32
    %c0_i32_1 = arith.constant 0 : i32
    return %arg0, %c0_i32, %c0_i32_0 : i32, i32, i32
  }
  func.func @transform_4(%arg0: i32) -> (i32, i32) {
    %c0_i32 = arith.constant 0 : i32
    %c0_i32_0 = arith.constant 0 : i32
    %c0_i32_1 = arith.constant 0 : i32
    return %c0_i32, %c0_i32_0 : i32, i32
  }
  func.func @transform_5(%arg0: i32) -> (i32, i32) {
    %c0_i32 = arith.constant 0 : i32
    %c0_i32_0 = arith.constant 0 : i32
    %c0_i32_1 = arith.constant 0 : i32
    return %c0_i32, %c0_i32_0 : i32, i32
  }
  func.func @transform_6(%arg0: i32) -> (i32, i32, i32) {
    %c0_i32 = arith.constant 0 : i32
    %c0_i32_0 = arith.constant 0 : i32
    %c0_i32_1 = arith.constant 0 : i32
    return %arg0, %c0_i32, %c0_i32_0 : i32, i32, i32
  }
}

</mosaic_0001>

<bundles_post_ra>
// kernel: tpu_custom_call.1
= control target key start
LH: loop header
LB: loop body
LE: loop exit
PB: predicated region body
PF: predicated region fallthrough
CT: control target
= control target key end

     0   :  { %11 = vsyncpa [#allocation3], 0  ;;  %s2887_s0 = inlined_call_operand.vmem [shape: bf16[8,32,32], index: 0, kind: input, shape index: {}]   ;;  %s2888_s1 = inlined_call_operand.vmem [shape: f32[8,32,16], index: 1, kind: input, shape index: {}]   ;;  %s2889_s2 = inlined_call_operand.vmem [shape: f32[8,1,32], index: 2, kind: input, shape index: {}]   ;;  %s2890_s3 = inlined_call_operand.vmem [shape: f32[8,32,1], index: 3, kind: input, shape index: {}]   ;;  %s2891_s4 = inlined_call_operand.vmem [shape: f32[32,32], index: 4, kind: input, shape index: {}]   ;;  %s2892_s5 = inlined_call_operand.vmem [shape: f32[1,32], index: 5, kind: input, shape index: {}]   ;;  %s2893_s6 = inlined_call_operand.hbm [shape: f32[2,32,128], index: 6, kind: output, shape index: {}]  }
   0x1   :  { %13 = vsyncpa [#allocation3 + $0x1], 0  ;;  %s2458_s21 = smov 0   ;;  %s2460_s22 = smov 0  }
   0x2   :  { %s2462_s23 = smov 0   ;;  %s2464_s24 = smov 0  }
   0x3 LB: > { %s2479_s25 = sadd.s32 4294967295, %s2414_s24   ;;  %s1917_s26 = sadd.s32 4294967294, %s2414_s24   ;;  %s2414_s24 = sphi %s2464_s24, %s2899_s24   ;;  %s2410_s23 = sphi %s2462_s23, %s2898_s23   ;;  %s2406_s22 = sphi %s2460_s22, %s2897_s22   ;;  %s2402_s21 = sphi %s2458_s21, %s2896_s21  }
   0x4   : > { %s2483_s27 = sadd.s32 1, %s2414_s24   ;;  %s172_s28 = sadd.s32 1, %s2410_s23 }
   0x5   : > { %s169_s29 = ssub.s32 %s2414_s24, %s2483_s27  ;;  %p182_p0 = scmp.ne.s32.totalorder %s2410_s23, %s2406_s22 }
   0x6   : > { %p170_p1 = scmp.eq.s32.totalorder %s169_s29, 0  ;;  %p183_p2 = scmp.eq.s32.totalorder %s2479_s25, 1 }
   0x7   : > { %p188_p3 = scmp.ne.s32.totalorder %s2406_s22, %s2402_s21  ;;  %p189_p4 = scmp.eq.s32.totalorder %s1917_s26, 1 }
   0x8   : > { %s2494_s30 = scalar_select %p170_p1, %s2410_s23, %s172_s28  }
   0x9   : > { %p2496_p5 = por %p183_p2, %p182_p0  ;;  %p2500_p6 = por %p189_p4, %p188_p3 }
   0xa   : > { %p1920_p7 = scmp.ge.s32.totalorder %s2414_s24, 1  ;;  %p251_p8 = scmp.lt.s32.totalorder %s2414_s24, 3 }
   0xc   : > { %p252_p9 = pnand %p1920_p7, %p251_p8 }
   0xd   : > { %s1922_s9 = sshll.u32 (!%p252_p9), %s2479_s25, 2  ;;  %vm357_vm0 = vcmask (!%p252_p9), 261120   ;;  %v2416_v30 = vmov (!%p252_p9), 0   ;;  %vm481_vm9 = vcmask (!%p252_p9), 130048   ;;  %s2417_s19 = smov (!%p252_p9), 32  }
   0xe   : > { %255 = sbr.rel (%p252_p9) target bundleno = 1142 (0x476), region = 44  ;;  %p299_p10 = scmp.lt.s32.totalorder (!%p252_p9), %s1922_s9, 7  ;;  %2302 = vset.pattern.permute.xlu0 (!%p252_p9), %v2416_v30  ;;  %2303 = vset.pattern.permute.xlu1 (!%p252_p9), %v2416_v30 }
   0xf   : > { %s2419_s26 = smov (!%p252_p9), 96   ;;  %s295_s28 = sand.u32 (!%p252_p9), 1, %s2406_s22  }
  0x10   : > { %s2032_s11 = sshll.u32 (!%p252_p9), %s2479_s25, 9  ;;  %s2846_s14 = scalar_lea.sflag (!%p252_p9), [#allocation3], %s295_s28 }
  0x15   : > { %s2901_s9 = smov (!%p299_p10, %s1922_s9), 7 }
  0x16   : > { %s2029_s10 = sshll.u32 %s2901_s9, 4  ;;  %s2519_s16 = scalar_lea.vmem %s2889_s2, %s2901_s9 }
  0x17   : > { %s2513_s13 = scalar_lea.vmem %s2887_s0, %s2029_s10  ;;  %v1932_v3 = vld [vmem:[%s2519_s16] ss:$0 sm:$0xff]  ;;  %v1959_v12 = vld [vmem:[%s2519_s16 + $0x1] ss:$0 sm:$0xff]  ;;  %s2030_s17 = sshll.u32 %s2901_s9, 5 }
  0x18   : > { %v2522_v0 = vld [vmem:[%s2513_s13 + $0x8] sm:$0xff]   ;;  %v2525_v1 = vld [vmem:[%s2513_s13] sm:$0xff]   ;;  %v2528_v2 = vld [vmem:[%s2513_s13 + $0x10] sm:$0xff]   ;;  %s2557_s20 = scalar_lea.vmem %s2890_s3, %s2030_s17  ;;  %s2628_s29 = scalar_lea.vmem %s2888_s1, %s2030_s17 }
  0x19   : > { %v345_v4 = vunpack.c.l.bf16 %v2522_v0  ;;  %v343_v5 = vunpack.c.l.bf16 %v2525_v1  ;;  %v346_v6 = vunpack.c.h.bf16 %v2522_v0  ;;  %v344_v7 = vunpack.c.h.bf16 %v2525_v1  ;;  %v2539_v14 = vld [vmem:[%s2513_s13 + $0x18] sm:$0xff]   ;;  %v339_v35 = vld [vmem:[%s2557_s20] sm:$0xff]  ;;  %v340_v41 = vld [vmem:[%s2557_s20 + $0x8] sm:$0xff]  ;;  %2101 = vmatprep.mubr.msk.bf16.mxu0 %vm357_vm0, %v2525_v1 }
  0x1a   : > { %v703_v8 = vunpack.c.l.bf16 %v2528_v2  ;;  %v704_v13 = vunpack.c.h.bf16 %v2528_v2  ;;  %v705_v19 = vunpack.c.l.bf16 %v2539_v14  ;;  %v706_v23 = vunpack.c.h.bf16 %v2539_v14  ;;  %v341_v46 = vld [vmem:[%s2557_s20 + $0x10] sm:$0xff]  ;;  %v342_v51 = vld [vmem:[%s2557_s20 + $0x18] sm:$0xff]  ;;  %v1955_v56 = vld [vmem:[%s2557_s20 + $0x20] sm:$0xff] }
  0x1b   : > { %v355_v9 = vmul.f32 %v1932_v3, %v345_v4  ;;  %v353_v10 = vmul.f32 %v1932_v3, %v343_v5  ;;  %v356_v11 = vmul.f32 %v1932_v3, %v346_v6  ;;  %v354_v15 = vmul.f32 %v1932_v3, %v344_v7  ;;  %v1956_v60 = vld [vmem:[%s2557_s20 + $0x28] sm:$0xff]  ;;  %v2583_v63 = vld [vmem:[%s2513_s13 + $0x20] sm:$0xff]   ;;  %v1957_v4 = vld [vmem:[%s2557_s20 + $0x30] sm:$0xff] }
  0x1c   : > { %v713_v18 = vmul.f32 %v1959_v12, %v703_v8  ;;  %v714_v22 = vmul.f32 %v1959_v12, %v704_v13  ;;  %v715_v26 = vmul.f32 %v1959_v12, %v705_v19  ;;  %v716_v27 = vmul.f32 %v1959_v12, %v706_v23  ;;  %v1985_v8 = vld [vmem:[%s2519_s16 + $0x2] ss:$0 sm:$0xff]  ;;  %v2603_v1 = vld [vmem:[%s2513_s13 + $0x28] sm:$0xff]  }
  0x1d   : > { %v364_v16 = vsel %vm357_vm0, %v355_v9, 0.0  ;;  %v358_v17 = vsel %vm357_vm0, %v353_v10, 0.0  ;;  %v367_v20 = vsel %vm357_vm0, %v356_v11, 0.0  ;;  %v361_v21 = vsel %vm357_vm0, %v354_v15, 0.0  ;;  %v2594_v9 = vld [vmem:[%s2513_s13 + $0x30] sm:$0xff]   ;;  %v1958_v11 = vld [vmem:[%s2557_s20 + $0x38] sm:$0xff] }
  0x1e   : > { %365 = vadd.xlane.f32.xlu1 %v364_v16  ;;  %359 = vadd.xlane.f32.xlu0 %v358_v17  ;;  %v717_v24 = vsel %vm357_vm0, %v713_v18, 0.0  ;;  %v720_v25 = vsel %vm357_vm0, %v714_v22, 0.0  ;;  %v723_v28 = vsel %vm357_vm0, %v715_v26, 0.0  ;;  %v726_v29 = vsel %vm357_vm0, %v716_v27, 0.0  ;;  %v2011_v16 = vld [vmem:[%s2519_s16 + $0x3] ss:$0 sm:$0xff] }
  0x1f   : > { %v1056_v7 = vunpack.c.h.bf16 %v2583_v63  ;;  %v1407_v15 = vunpack.c.l.bf16 %v2594_v9  ;;  %v1408_v30 = vunpack.c.h.bf16 %v2594_v9  ;;  %s2420_s16 = smov [#allocation2]  }
  0x20   : > { %s2356_s17 = sshll.u32 %s2420_s16, 4  ;;  %s2357_s17 = int_to_ptr.vmem [resolvable:$false] %s2356_s17 }
  0x21   : > { %v1066_v13 = vmul.f32 %v1985_v8, %v1056_v7  ;;  %v1417_v19 = vmul.f32 %v2011_v16, %v1407_v15  ;;  %v2656_v15 = vld [vmem:[%s2628_s29 + $0x30] sm:$0xff]  ;;  %s2358_s18 = scalar_lea.vmem %s2357_s17, 1024 }
  0x22   : > { %368 = vadd.xlane.f32.xlu1 %v367_v20  ;;  %362 = vadd.xlane.f32.xlu0 %v361_v21  ;;  %v1057_v20 = vunpack.c.l.bf16 %v2603_v1  ;;  %v2609_v21 = vld [vmem:[%s2513_s13 + $0x38] sm:$0xff]   ;;  %s2841_s13 = scalar_lea.hbm %s2893_s6, %s2032_s11 }
  0x23   : > { %v1072_v18 = vsel %vm357_vm0, %v1066_v13, 0.0  ;;  %v1421_v22 = vsel %vm357_vm0, %v1417_v19, 0.0 }
  0x24   : > { %v1067_v23 = vmul.f32 %v1985_v8, %v1057_v20 }
  0x26   : > { %718 = vadd.xlane.f32.xlu0 %v717_v24  ;;  %721 = vadd.xlane.f32.xlu1 %v720_v25  ;;  %v1409_v24 = vunpack.c.l.bf16 %v2609_v21  ;;  %v1075_v25 = vsel %vm357_vm0, %v1067_v23, 0.0 }
  0x28   : > { %v1419_v26 = vmul.f32 %v2011_v16, %v1409_v24  ;;  %v1982_v24 = vld [vmem:[%s2557_s20 + $0x48] sm:$0xff] }
  0x2a   : > { %724 = vadd.xlane.f32.xlu0 %v723_v28  ;;  %727 = vadd.xlane.f32.xlu1 %v726_v29  ;;  %v1427_v27 = vsel %vm357_vm0, %v1419_v26, 0.0  ;;  %v1055_v28 = vunpack.c.l.bf16 %v2583_v63 }
  0x2c   : > { %v1065_v29 = vmul.f32 %v1985_v8, %v1055_v28 }
  0xab   : > { %v360_v31 = vpop.xlane.xlu0 %359  ;;  %v366_v32 = vpop.xlane.xlu1 %365 }
  0xac   : > { %2320 = vrsqrt.f32 %v360_v31  ;;  %vm370_vm1 = vcmp.eq.f32.partialorder %v360_v31, 0.0  ;;  %vm372_vm3 = vcmp.eq.f32.partialorder %v366_v32, 0.0  ;;  %v1069_v31 = vsel %vm357_vm0, %v1065_v29, 0.0 }
  0xad   : > { %2322 = vrsqrt.f32 %v366_v32  ;;  %v1418_v32 = vmul.f32 %v2011_v16, %v1408_v30  ;;  %v1983_v30 = vld [vmem:[%s2557_s20 + $0x50] sm:$0xff] }
  0xaf   : > { %v363_v33 = vpop.xlane.xlu0 %362  ;;  %v369_v34 = vpop.xlane.xlu1 %368 }
  0xb0   : > { %2324 = vrsqrt.f32 %v363_v33  ;;  %vm371_vm2 = vcmp.eq.f32.partialorder %v363_v33, 0.0  ;;  %vm373_vm4 = vcmp.eq.f32.partialorder %v369_v34, 0.0  ;;  %v1058_v33 = vunpack.c.h.bf16 %v2603_v1 }
  0xb1   : > { %2326 = vrsqrt.f32 %v369_v34  ;;  %v1424_v34 = vsel %vm357_vm0, %v1418_v32, 0.0 }
  0xb3   : > { %v719_v36 = vpop.xlane.xlu0 %718  ;;  %v722_v42 = vpop.xlane.xlu1 %721 }
  0xb4   : > { %2328 = vrsqrt.f32 %v719_v36  ;;  %vm729_vm5 = vcmp.eq.f32.partialorder %v719_v36, 0.0  ;;  %vm730_vm6 = vcmp.eq.f32.partialorder %v722_v42, 0.0  ;;  %v1410_v36 = vunpack.c.h.bf16 %v2609_v21 }
  0xb5   : > { %2330 = vrsqrt.f32 %v722_v42 }
  0xb6   : > { %v2321_v37 = vpop.eup %2320 }
  0xb7   : > { %v2560_v38 = vsel %vm370_vm1, 1.0, %v2321_v37  ;;  %v2323_v40 = vpop.eup %2322  ;;  %v725_v48 = vpop.xlane.xlu0 %724 }
  0xb8   : > { %v382_v39 = vmul.f32 %v2560_v38, %v339_v35  ;;  %v2568_v47 = vsel %vm372_vm3, 1.0, %v2323_v40  ;;  %2332 = vrsqrt.f32 %v725_v48  ;;  %v728_v53 = vpop.xlane.xlu1 %727  ;;  %vm731_vm7 = vcmp.eq.f32.partialorder %v725_v48, 0.0 }
  0xb9   : > { %v384_v50 = vmul.f32 %v2568_v47, %v341_v46  ;;  %2334 = vrsqrt.f32 %v728_v53  ;;  %vm732_vm8 = vcmp.eq.f32.partialorder %v728_v53, 0.0  ;;  %v1068_v35 = vmul.f32 %v1985_v8, %v1058_v33  ;;  %v337_v53 = vld [vmem:[%s2628_s29 + $0x18] sm:$0xff] }
  0xba   : > { %v2325_v43 = vpop.eup %2324  ;;  %388 = vperm.xlu0 %2302, %v382_v39   ;;  %v1420_v39 = vmul.f32 %v2011_v16, %v1410_v36  ;;  %v2659_v16 = vld [vmem:[%s2628_s29 + $0x38] sm:$0xff]  ;;  %vm1794_vm3 = vcmask 523264  }
  0xbb   : > { %v2564_v44 = vsel %vm371_vm2, 1.0, %v2325_v43  ;;  %v2327_v49 = vpop.eup %2326  ;;  %v1078_v37 = vsel %vm357_vm0, %v1068_v35, 0.0  ;;  %v335_v43 = vld [vmem:[%s2628_s29 + $0x8] sm:$0xff] }
  0xbc   : > { %v383_v45 = vmul.f32 %v2564_v44, %v340_v41  ;;  %v2572_v52 = vsel %vm373_vm4, 1.0, %v2327_v49  ;;  %v1430_v40 = vsel %vm357_vm0, %v1420_v39, 0.0  ;;  %v334_v41 = vld [vmem:[%s2628_s29] sm:$0xff]  ;;  %vm1799_vm4 = vcmask 785408  }
  0xbd   : > { %v385_v55 = vmul.f32 %v2572_v52, %v342_v51  ;;  %v336_v51 = vld [vmem:[%s2628_s29 + $0x10] sm:$0xff] }
  0xbe   : > { %393 = vperm.xlu1 %2303, %v383_v45   ;;  %v2329_v54 = vpop.eup %2328 }
  0xbf   : > { %v2576_v57 = vsel %vm729_vm5, 1.0, %v2329_v54  ;;  %v2331_v58 = vpop.eup %2330 }
  0xc0   : > { %v741_v59 = vmul.f32 %v1955_v56, %v2576_v57  ;;  %v2580_v61 = vsel %vm730_vm6, 1.0, %v2331_v58  ;;  %v328_v56 = vld [vmem:[%s2891_s4 + $0x18] sm:$0xff] }
  0xc1   : > { %v742_v3 = vmul.f32 %v1956_v60, %v2580_v61 }
  0xc2   : > { %398 = vperm.xlu1 %2303, %v384_v50   ;;  %v2333_v62 = vpop.eup %2332 }
  0xc3   : > { %v2587_v5 = vsel %vm731_vm7, 1.0, %v2333_v62  ;;  %v2335_v6 = vpop.eup %2334 }
  0xc4   : > { %v743_v10 = vmul.f32 %v1957_v4, %v2587_v5  ;;  %v2598_v12 = vsel %vm732_vm8, 1.0, %v2335_v6  ;;  %v2643_v4 = vld [vmem:[%s2628_s29 + $0x20] sm:$0xff]  ;;  %v2646_v6 = vld [vmem:[%s2628_s29 + $0x28] sm:$0xff] }
  0xc5   : > { %v744_v17 = vmul.f32 %v1958_v11, %v2598_v12 }
  0xc6   : > { %403 = vperm.xlu1 %2303, %v385_v55   ;;  %v327_v55 = vld [vmem:[%s2891_s4 + $0x10] sm:$0xff] }
  0xc7   : > { %v2640_v62 = vpack.c.bf16 %v328_v56, %v327_v55 }
  0xca   : > { %747 = vperm.xlu1 %2303, %v741_v59  }
  0xce   : > { %752 = vperm.xlu1 %2303, %v742_v3  }
  0xd2   : > { %757 = vperm.xlu1 %2303, %v743_v10  }
  0xd6   : > { %762 = vperm.xlu1 %2303, %v744_v17  }
  0xd9   : > { %1073 = vadd.xlane.f32.xlu0 %v1072_v18 }
  0xdd   : > { %1422 = vadd.xlane.f32.xlu0 %v1421_v22 }
  0xe1   : > { %1076 = vadd.xlane.f32.xlu0 %v1075_v25 }
  0xe5   : > { %1428 = vadd.xlane.f32.xlu0 %v1427_v27  ;;  %v2007_v27 = vld [vmem:[%s2557_s20 + $0x60] sm:$0xff] }
  0xfa   : > { %1070 = vadd.xlane.f32.xlu1 %v1069_v31 }
  0xfe   : > { %1425 = vadd.xlane.f32.xlu1 %v1424_v34  ;;  %v2009_v34 = vld [vmem:[%s2557_s20 + $0x70] sm:$0xff] }
 0x102   : > { %1079 = vadd.xlane.f32.xlu1 %v1078_v37 }
 0x106   : > { %1431 = vadd.xlane.f32.xlu1 %v1430_v40 }
 0x139   : > { %v389_v42 = vpop.permute.xlu0 %388 }
 0x13a   : > { %v406_v46 = vmul.f32 %v389_v42, %v334_v41  ;;  %v1981_v42 = vld [vmem:[%s2557_s20 + $0x40] sm:$0xff] }
 0x13d   : > { %v394_v45 = vpop.permute.xlu1 %393 }
 0x13e   : > { %v407_v48 = vmul.f32 %v394_v45, %v335_v43 }
 0x140   : > { %v410_v49 = vpack.c.bf16 %v407_v48, %v406_v46 }
 0x141   : > { %v399_v50 = vpop.permute.xlu1 %398 }
 0x142   : > { %2097 = vmatprep.subr.bf16.mxu0 %v410_v49  ;;  %v408_v58 = vmul.f32 %v399_v50, %v336_v51 }
 0x143   : > { %2098 = vmatpush3.bf16.msra.mxu0 %v410_v49  ;;  %v2008_v49 = vld [vmem:[%s2557_s20 + $0x68] sm:$0xff] }
 0x145   : > { %v404_v54 = vpop.permute.xlu1 %403 }
 0x146   : > { %v409_v59 = vmul.f32 %v404_v54, %v337_v53  ;;  %v1984_v54 = vld [vmem:[%s2557_s20 + $0x58] sm:$0xff] }
 0x148   : > { %v411_v60 = vpack.c.bf16 %v409_v59, %v408_v58  ;;  %v2010_v59 = vld [vmem:[%s2557_s20 + $0x78] sm:$0xff]  ;;  %s2418_s20 = smov 64  }
 0x149   : > { %v748_v3 = vpop.permute.xlu1 %747 }
 0x14a   : > { %2099 = vmatprep.subr.bf16.mxu0 %v411_v60  ;;  %v765_v8 = vmul.f32 %v2643_v4, %v748_v3 }
 0x14b   : > { %2100 = vmatpush3.bf16.msra.mxu0 %v411_v60 }
 0x14c   : > { %2210 = vmatprep.subr.bf16.mxu0 %v2640_v62 }
 0x14d   : > { %v753_v7 = vpop.permute.xlu1 %752 }
 0x14e   : > { %v766_v10 = vmul.f32 %v2646_v6, %v753_v7  ;;  %2102 = vmatmul.mubr.msk.bf16.vlgmr.msra.gmra.mrb[0].mxu0 %vm357_vm0, %v2522_v0 }
 0x14f   : > { %2212 = vmatpush3.bf16.msra.mxu0 %v2640_v62  ;;  %2109 = vmatprep.mubr.msk.f32.mxu0 %vm481_vm9, %v334_v41 }
 0x150   : > { %v769_v11 = vpack.c.bf16 %v766_v10, %v765_v8  ;;  %v325_v8 = vld [vmem:[%s2891_s4] sm:$0xff]  ;;  %v326_v10 = vld [vmem:[%s2891_s4 + $0x8] sm:$0xff] }
 0x151   : > { %v758_v13 = vpop.permute.xlu1 %757 }
 0x152   : > { %2125 = vmatprep.subr.bf16.mxu0 %v769_v11  ;;  %v767_v18 = vmul.f32 %v2656_v15, %v758_v13 }
 0x155   : > { %v763_v17 = vpop.permute.xlu1 %762 }
 0x156   : > { %v768_v19 = vmul.f32 %v2659_v16, %v763_v17  ;;  %2110 = vmatmul.mubr.msk.f32.vlgmr.msra.gmra.mrb[4].mxu0 %vm481_vm9, %v335_v43  ;;  %v1977_v17 = vld [vmem:[%s2628_s29 + $0x48] sm:$0xff] }
 0x157   : > { %2126 = vmatpush3.bf16.msra.mxu0 %v769_v11  ;;  %2112 = vmatprep.mubr.msk.f32.mxu0 %vm481_vm9, %v336_v51  ;;  %v2710_v11 = vpack.c.bf16 %v326_v10, %v325_v8 }
 0x158   : > { %v770_v0 = vpack.c.bf16 %v768_v19, %v767_v18  ;;  %v1976_v18 = vld [vmem:[%s2628_s29 + $0x40] sm:$0xff] }
 0x159   : > { %2214 = vmatprep.subr.bf16.mxu1 %v2710_v11 }
 0x15a   : > { %2113 = vmatmul.mubr.msk.f32.gmra.mrb[6].mxu0 %vm481_vm9, %v337_v53  ;;  %2127 = vmatprep.subr.bf16.mxu0 %v770_v0 }
 0x15b   : > { %2128 = vmatpush3.bf16.msra.mxu0 %v770_v0  ;;  %2129 = vmatprep.mubr.msk.bf16.mxu0 %vm357_vm0, %v2528_v2 }
 0x15c   : > { %2216 = vmatpush3.bf16.msra.mxu1 %v2710_v11 }
 0x15d   : > { %2218 = vmatprep.subr.bf16.mxu1 %v2640_v62 }
 0x15e   : > { %2130 = vmatmul.mubr.msk.bf16.vlgmr.msra.gmra.mrb[8].mxu0 %vm357_vm0, %v2539_v14 }
 0x15f   : > { %2157 = vmatprep.mubr.msk.bf16.mxu0 %vm357_vm0, %v2583_v63 }
 0x166   : > { %v1074_v20 = vpop.xlane.xlu0 %1073 }
 0x167   : > { %2336 = vrsqrt.f32 %v1074_v20  ;;  %vm1082_vm10 = vcmp.eq.f32.partialorder %v1074_v20, 0.0 }
 0x16a   : > { %v1423_v22 = vpop.xlane.xlu0 %1422 }
 0x16b   : > { %2338 = vrsqrt.f32 %v1423_v22  ;;  %vm1433_vm11 = vcmp.eq.f32.partialorder %v1423_v22, 0.0 }
 0x16e   : > { %v1077_v23 = vpop.xlane.xlu0 %1076 }
 0x16f   : > { %2340 = vrsqrt.f32 %v1077_v23  ;;  %vm1083_vm12 = vcmp.eq.f32.partialorder %v1077_v23, 0.0 }
 0x171   : > { %v2337_v25 = vpop.eup %2336 }
 0x172   : > { %v2673_v26 = vsel %vm1082_vm10, 1.0, %v2337_v25  ;;  %v1429_v2 = vpop.xlane.xlu0 %1428  ;;  %v1978_v25 = vld [vmem:[%s2628_s29 + $0x50] sm:$0xff] }
 0x173   : > { %v1094_v14 = vmul.f32 %v1982_v24, %v2673_v26  ;;  %2342 = vrsqrt.f32 %v1429_v2  ;;  %vm1435_vm13 = vcmp.eq.f32.partialorder %v1429_v2, 0.0 }
 0x175   : > { %v2339_v63 = vpop.eup %2338  ;;  %1104 = vperm.xlu1 %2303, %v1094_v14   ;;  %v1979_v14 = vld [vmem:[%s2628_s29 + $0x58] sm:$0xff] }
 0x176   : > { %v2677_v28 = vsel %vm1433_vm11, 1.0, %v2339_v63 }
 0x177   : > { %v1445_v29 = vmul.f32 %v2007_v27, %v2677_v28 }
 0x179   : > { %v2341_v31 = vpop.eup %2340  ;;  %1451 = vperm.xlu1 %2303, %v1445_v29  }
 0x17a   : > { %v2681_v32 = vsel %vm1083_vm12, 1.0, %v2341_v31 }
 0x17b   : > { %v1095_v33 = vmul.f32 %v1983_v30, %v2681_v32 }
 0x17d   : > { %v2343_v35 = vpop.eup %2342  ;;  %1109 = vperm.xlu1 %2303, %v1095_v33  }
 0x17e   : > { %v2685_v36 = vsel %vm1435_vm13, 1.0, %v2343_v35 }
 0x17f   : > { %v1447_v37 = vmul.f32 %v2009_v34, %v2685_v36 }
 0x181   : > { %1461 = vperm.xlu1 %2303, %v1447_v37  }
 0x187   : > { %v1071_v39 = vpop.xlane.xlu1 %1070 }
 0x188   : > { %2344 = vrsqrt.f32 %v1071_v39  ;;  %vm1081_vm14 = vcmp.eq.f32.partialorder %v1071_v39, 0.0 }
 0x18b   : > { %v1426_v40 = vpop.xlane.xlu1 %1425 }
 0x18c   : > { %2346 = vrsqrt.f32 %v1426_v40  ;;  %vm1434_vm15 = vcmp.eq.f32.partialorder %v1426_v40, 0.0 }
 0x18f   : > { %v1080_v41 = vpop.xlane.xlu1 %1079 }
 0x190   : > { %2348 = vrsqrt.f32 %v1080_v41  ;;  %vm1084_vm1 = vcmp.eq.f32.partialorder %v1080_v41, 0.0 }
 0x192   : > { %v2345_v43 = vpop.eup %2344 }
 0x193   : > { %v2689_v45 = vsel %vm1081_vm14, 1.0, %v2345_v43  ;;  %v1432_v46 = vpop.xlane.xlu1 %1431 }
 0x194   : > { %v1093_v48 = vmul.f32 %v1981_v42, %v2689_v45  ;;  %2350 = vrsqrt.f32 %v1432_v46  ;;  %vm1436_vm2 = vcmp.eq.f32.partialorder %v1432_v46, 0.0 }
 0x196   : > { %v2347_v50 = vpop.eup %2346  ;;  %1099 = vperm.xlu0 %2302, %v1093_v48  }
 0x197   : > { %v2693_v51 = vsel %vm1434_vm15, 1.0, %v2347_v50 }
 0x198   : > { %v1446_v53 = vmul.f32 %v2008_v49, %v2693_v51  ;;  %v2005_v49 = vld [vmem:[%s2628_s29 + $0x78] sm:$0xff] }
 0x19a   : > { %v2349_v55 = vpop.eup %2348  ;;  %1456 = vperm.xlu0 %2302, %v1446_v53   ;;  %v2004_v53 = vld [vmem:[%s2628_s29 + $0x70] sm:$0xff] }
 0x19b   : > { %v2697_v56 = vsel %vm1084_vm1, 1.0, %v2349_v55 }
 0x19c   : > { %v1096_v58 = vmul.f32 %v1984_v54, %v2697_v56 }
 0x19e   : > { %v2351_v60 = vpop.eup %2350  ;;  %1114 = vperm.xlu0 %2302, %v1096_v58  }
 0x19f   : > { %v2701_v3 = vsel %vm1436_vm2, 1.0, %v2351_v60 }
 0x1a0   : > { %v1448_v7 = vmul.f32 %v2010_v59, %v2701_v3 }
 0x1a2   : > { %1466 = vperm.xlu0 %2302, %v1448_v7  }
 0x1f4   : > { %v1105_v13 = vpop.permute.xlu1 %1104 }
 0x1f5   : > { %v1118_v20 = vmul.f32 %v1977_v17, %v1105_v13 }
 0x1f8   : > { %v1452_v19 = vpop.permute.xlu1 %1451 }
 0x1fc   : > { %v1110_v2 = vpop.permute.xlu1 %1109 }
 0x1fd   : > { %v1119_v63 = vmul.f32 %v1978_v25, %v1110_v2 }
 0x200   : > { %v1462_v54 = vpop.permute.xlu1 %1461 }
 0x201   : > { %v1471_v7 = vmul.f32 %v2004_v53, %v1462_v54 }
 0x215   : > { %v1100_v0 = vpop.permute.xlu0 %1099 }
 0x216   : > { %v1117_v22 = vmul.f32 %v1976_v18, %v1100_v0 }
 0x218   : > { %v1121_v23 = vpack.c.bf16 %v1118_v20, %v1117_v22 }
 0x219   : > { %v1457_v24 = vpop.permute.xlu0 %1456 }
 0x21a   : > { %2153 = vmatprep.subr.bf16.mxu0 %v1121_v23 }
 0x21b   : > { %2154 = vmatpush3.bf16.msra.mxu0 %v1121_v23 }
 0x21d   : > { %v1115_v27 = vpop.permute.xlu0 %1114 }
 0x21e   : > { %v1120_v29 = vmul.f32 %v1979_v14, %v1115_v27 }
 0x220   : > { %v1122_v30 = vpack.c.bf16 %v1120_v29, %v1119_v63 }
 0x221   : > { %v2103_v31 = vpop.f32.mrb[0].mxu0  ;;  %v1467_v50 = vpop.permute.xlu0 %1466 }
 0x222   : > { %v462_v33 = vpop.f32.mrb[1].mxu0  ;;  %2155 = vmatprep.subr.bf16.mxu0 %v1122_v30  ;;  %v479_v40 = vmul.f32 %v2103_v31, %v2568_v47  ;;  %v1472_v58 = vmul.f32 %v2005_v49, %v1467_v50 }
 0x223   : > { %v477_v34 = vmul.f32 %v462_v33, %v2560_v38  ;;  %v2104_v35 = vpop.f32.mrb[2].mxu0  ;;  %2156 = vmatpush3.bf16.msra.mxu0 %v1122_v30  ;;  %v2003_v38 = vld [vmem:[%s2628_s29 + $0x68] sm:$0xff] }
 0x224   : > { %v465_v37 = vpop.f32.mrb[3].mxu0  ;;  %2226 = vmatprep.subr.bf16.mxu0 %v2640_v62  ;;  %v480_v41 = vmul.f32 %v2104_v35, %v2572_v52  ;;  %v1474_v10 = vpack.c.bf16 %v1472_v58, %v1471_v7 }
 0x225   : > { %v478_v39 = vmul.f32 %v465_v37, %v2564_v44  ;;  %2119 = vmatprep.mubr.msk.f32.mxu1 %vm481_vm9, %v477_v34  ;;  %v2002_v44 = vld [vmem:[%s2628_s29 + $0x60] sm:$0xff]  ;;  %s1921_s29 = sshll.u32 %s295_s28, 5 }
 0x226   : > { %2158 = vmatmul.mubr.msk.bf16.vlgmr.msra.gmra.mrb[12].mxu0 %vm357_vm0, %v2603_v1  ;;  %v1470_v1 = vmul.f32 %v2003_v38, %v1457_v24  ;;  %v1469_v43 = vmul.f32 %v2002_v44, %v1452_v19  ;;  %s297_s9 = scalar_lea.vmem [#allocation2], %s1921_s29 }
 0x227   : > { %2120 = vmatmul.mubr.msk.f32.vlgmr.msra.gmra.mrb[0].mxu1 %vm481_vm9, %v478_v39  ;;  %2228 = vmatpush3.bf16.msra.mxu0 %v2640_v62  ;;  %s1822_s10 = sshll.u32 %s297_s9, 4  ;;  %s2834_s10 = int_to_ptr.vmem [resolvable:$true] %s1822_s10 }
 0x228   : > { %2122 = vmatprep.mubr.msk.f32.mxu1 %vm481_vm9, %v479_v40  ;;  %2220 = vmatpush3.bf16.msra.mxu1 %v2640_v62  ;;  %v1473_v48 = vpack.c.bf16 %v1470_v1, %v1469_v43  ;;  %s2352_s15 = scalar_lea.vmem %s2834_s10, 512  ;;  %p2359_p0 = scmp.lt.s32.totalorder %s2834_s10, %s2357_s17 }
 0x229   : > { %v2111_v42 = vpop.f32.mrb[4].mxu0  ;;  %2222 = vmatprep.subr.bf16.mxu1 %v2710_v11  ;;  %2165 = vmatprep.mubr.msk.f32.mxu0 %vm481_vm9, %v1976_v18  ;;  %p2353_p11 = scmp.ne.s32.totalorder %s2834_s10, %s2352_s15  ;;  %p2360_p1 = scmp.lt.s32.totalorder %s2358_s18, %s2352_s15 }
 0x22a   : > { %v560_v47 = vpop.f32.mrb[5].mxu0  ;;  %2230 = vmatprep.subr.bf16.mxu0 %v2710_v11 }
 0x22b   : > { %2123 = vmatmul.mubr.msk.f32.gmra.mrb[2].mxu1 %vm481_vm9, %v480_v41  ;;  %p2354_p12 = pnand %p2353_p11, %p2496_p5  ;;  %p2361_p2 = por %p2360_p1, %p2359_p0 }
 0x22c   : > { %2137 = vmatprep.mubr.msk.f32.mxu1 %vm481_vm9, %v2643_v4 }
 0x22d   : > { %v2114_v46 = vpop.f32.mrb[6].mxu0  ;;  %p2355_p13 = pneg %p2354_p12 }
 0x22e   : > { %v570_v52 = vpop.f32.mrb[7].mxu0  ;;  %2166 = vmatmul.mubr.msk.f32.vlgmr.msra.gmra.mrb[16].mxu0 %vm481_vm9, %v1977_v17 }
 0x22f   : > { %2138 = vmatmul.mubr.msk.f32.vlgmr.msra.gmra.mrb[4].mxu1 %vm481_vm9, %v2646_v6  ;;  %2168 = vmatprep.mubr.msk.f32.mxu0 %vm481_vm9, %v1978_v25  ;;  %p2362_p3 = pnand %p2361_p2, %p2355_p13 }
 0x230   : > { %2224 = vmatpush3.bf16.msra.mxu1 %v2710_v11  ;;  %2140 = vmatprep.mubr.msk.f32.mxu1 %vm481_vm9, %v2656_v15 }
 0x231   : > { %2181 = vmatprep.subr.bf16.mxu1 %v1473_v48  ;;  %v2131_v4 = vpop.f32.mrb[8].mxu0  ;;  %2232 = vmatpush3.bf16.msra.mxu0 %v2710_v11 }
 0x232   : > { %v821_v55 = vpop.f32.mrb[9].mxu0  ;;  %2169 = vmatmul.mubr.msk.f32.gmra.mrb[18].mxu0 %vm481_vm9, %v1979_v14  ;;  %v838_v8 = vmul.f32 %v2131_v4, %v2587_v5 }
 0x233   : > { %v836_v6 = vmul.f32 %v821_v55, %v2576_v57  ;;  %v2132_v59 = vpop.f32.mrb[10].mxu0  ;;  %2141 = vmatmul.mubr.msk.f32.gmra.mrb[6].mxu1 %vm481_vm9, %v2659_v16 }
 0x234   : > { %v824_v60 = vpop.f32.mrb[11].mxu0  ;;  %v839_v57 = vmul.f32 %v2132_v59, %v2598_v12 }
 0x235   : > { %v837_v15 = vmul.f32 %v824_v60, %v2580_v61  ;;  %2147 = vmatprep.mubr.msk.f32.mxu1 %vm481_vm9, %v836_v6 }
 0x237   : > { %2148 = vmatmul.mubr.msk.f32.vlgmr.msra.gmra.mrb[4].mxu1 %vm481_vm9, %v837_v15 }
 0x238   : > { %2182 = vmatpush3.bf16.msra.mxu1 %v1473_v48  ;;  %2150 = vmatprep.mubr.msk.f32.mxu1 %vm481_vm9, %v838_v8 }
 0x239   : > { %2183 = vmatprep.subr.bf16.mxu1 %v1474_v10 }
 0x23b   : > { %2151 = vmatmul.mubr.msk.f32.gmra.mrb[6].mxu1 %vm481_vm9, %v839_v57 }
 0x23c   : > { %2184 = vmatpush3.bf16.msra.mxu1 %v1474_v10  ;;  %2185 = vmatprep.mubr.msk.bf16.mxu1 %vm357_vm0, %v2594_v9 }
 0x23d   : > { %2234 = vmatprep.subr.bf16.mxu1 %v2640_v62 }
 0x23f   : > { %2186 = vmatmul.mubr.msk.bf16.vlgmr.msra.gmra.mrb[8].mxu1 %vm357_vm0, %v2609_v21 }
 0x240   : > { %2236 = vmatpush3.bf16.msra.mxu1 %v2640_v62  ;;  %2193 = vmatprep.mubr.msk.f32.mxu1 %vm481_vm9, %v2002_v44 }
 0x241   : > { %2238 = vmatprep.subr.bf16.mxu1 %v2710_v11 }
 0x247   : > { %2194 = vmatmul.mubr.msk.f32.vlgmr.msra.gmra.mrb[12].mxu1 %vm481_vm9, %v2003_v38 }
 0x248   : > { %2240 = vmatpush3.bf16.msra.mxu1 %v2710_v11  ;;  %2196 = vmatprep.mubr.msk.f32.mxu1 %vm481_vm9, %v2004_v53 }
 0x24b   : > { %2197 = vmatmul.mubr.msk.f32.gmra.mrb[14].mxu1 %vm481_vm9, %v2005_v49 }
 0x2f9   : > { %v2159_v61 = vpop.f32.mrb[12].mxu0 }
 0x2fa   : > { %v2121_v5 = vpop.f32.mrb[0].mxu1  ;;  %v1173_v9 = vpop.f32.mrb[13].mxu0  ;;  %v1190_v11 = vmul.f32 %v2159_v61, %v2681_v32 }
 0x2fb   : > { %v2772_v12 = vadd.f32 %v2121_v5, %v2111_v42  ;;  %v1188_v21 = vmul.f32 %v1173_v9, %v2689_v45  ;;  %v657_v62 = vpop.f32.mrb[1].mxu1  ;;  %v2160_v16 = vpop.f32.mrb[14].mxu0 }
 0x2fc   : > { %v2775_v13 = vadd.f32 %v657_v62, %v560_v47  ;;  %v1176_v17 = vpop.f32.mrb[15].mxu0  ;;  %v1191_v45 = vmul.f32 %v2160_v16, %v2697_v56 }
 0x2fd   : > { %v1189_v18 = vmul.f32 %v1176_v17, %v2673_v26  ;;  %2175 = vmatprep.mubr.msk.f32.mxu0 %vm481_vm9, %v1188_v21  ;;  %v2791_v26 = vld [vmem:[%s2892_s5] ss:$0 sm:$0xff] }
 0x2fe   : > { %v2124_v19 = vpop.f32.mrb[2].mxu1  ;;  %v683_v6 = vadd.f32 %v2791_v26, %v2772_v12  ;;  %v682_v60 = vadd.f32 %v2791_v26, %v2775_v13 }
 0x2ff   : > { %v2780_v0 = vadd.f32 %v2124_v19, %v2114_v46  ;;  %v667_v20 = vpop.f32.mrb[3].mxu1  ;;  %2176 = vmatmul.mubr.msk.f32.vlgmr.msra.gmra.mrb[16].mxu0 %vm481_vm9, %v1189_v18 }
 0x300   : > { %v2783_v22 = vadd.f32 %v667_v20, %v570_v52  ;;  %2178 = vmatprep.mubr.msk.f32.mxu0 %vm481_vm9, %v1190_v11 }
 0x301   : > { %v685_v57 = vadd.f32 %v2791_v26, %v2780_v0 }
 0x302   : > { %v684_v12 = vadd.f32 %v2791_v26, %v2783_v22 }
 0x303   : > { %2179 = vmatmul.mubr.msk.f32.gmra.mrb[18].mxu0 %vm481_vm9, %v1191_v45 }
 0x30a   : > { %v2149_v32 = vpop.f32.mrb[4].mxu1 }
 0x30b   : > { %v1035_v23 = vadd.f32 %v2149_v32, %v2791_v26  ;;  %v1015_v24 = vpop.f32.mrb[5].mxu1 }
 0x30c   : > { %v1034_v25 = vadd.f32 %v2791_v26, %v1015_v24 }
 0x30d   : > { %1748 = vrot.lane.b32.xlu0 %v1035_v23, %s2417_s19 }
 0x30e   : > { %v2152_v2 = vpop.f32.mrb[6].mxu1  ;;  %1746 = vrot.lane.b32.xlu1 %v1034_v25, %s2417_s19 }
 0x30f   : > { %v1037_v14 = vadd.f32 %v2152_v2, %v2791_v26  ;;  %v1025_v56 = vpop.f32.mrb[7].mxu1 }
 0x310   : > { %v1036_v27 = vadd.f32 %v2791_v26, %v1025_v56 }
 0x311   : > { %1752 = vrot.lane.b32.xlu0 %v1037_v14, %s2417_s19 }
 0x312   : > { %1750 = vrot.lane.b32.xlu1 %v1036_v27, %s2417_s19  ;;  %v2187_v63 = vpop.f32.mrb[8].mxu1 }
 0x313   : > { %v1525_v29 = vpop.f32.mrb[9].mxu1  ;;  %v1542_v35 = vmul.f32 %v2187_v63, %v2685_v36 }
 0x314   : > { %v1540_v30 = vmul.f32 %v1525_v29, %v2677_v28  ;;  %v2188_v31 = vpop.f32.mrb[10].mxu1 }
 0x315   : > { %v1528_v33 = vpop.f32.mrb[11].mxu1  ;;  %v1543_v37 = vmul.f32 %v2188_v31, %v2701_v3 }
 0x316   : > { %v1541_v34 = vmul.f32 %v1528_v33, %v2693_v51  ;;  %2203 = vmatprep.mubr.msk.f32.mxu1 %vm481_vm9, %v1540_v30 }
 0x318   : > { %2204 = vmatmul.mubr.msk.f32.vlgmr.msra.gmra.mrb[12].mxu1 %vm481_vm9, %v1541_v34 }
 0x319   : > { %2206 = vmatprep.mubr.msk.f32.mxu1 %vm481_vm9, %v1542_v35 }
 0x31c   : > { %2207 = vmatmul.mubr.msk.f32.gmra.mrb[14].mxu1 %vm481_vm9, %v1543_v37 }
 0x37f   : > { %v1749_v49 = vpop.permute.xlu0 %1748 }
 0x380   : > { %v1747_v50 = vpop.permute.xlu1 %1746  ;;  %v1791_v7 = vsel %vm357_vm0, %v683_v6, %v1749_v49 }
 0x381   : > { %v1790_v15 = vsel %vm357_vm0, %v682_v60, %v1747_v50 }
 0x383   : > { %v1753_v4 = vpop.permute.xlu0 %1752 }
 0x384   : > { %v1751_v53 = vpop.permute.xlu1 %1750  ;;  %v1793_v62 = vsel %vm357_vm0, %v685_v57, %v1753_v4 }
 0x385   : > { %v1792_v16 = vsel %vm357_vm0, %v684_v12, %v1751_v53 }
 0x3d2   : > { %v2177_v39 = vpop.f32.mrb[16].mxu0 }
 0x3d3   : > { %v1387_v40 = vadd.f32 %v2177_v39, %v2791_v26  ;;  %v1367_v28 = vpop.f32.mrb[17].mxu0 }
 0x3d4   : > { %v1386_v38 = vadd.f32 %v2791_v26, %v1367_v28 }
 0x3d5   : > { %1764 = vrot.lane.b32.xlu0 %v1387_v40, %s2418_s20 }
 0x3d6   : > { %1762 = vrot.lane.b32.xlu1 %v1386_v38, %s2418_s20  ;;  %v2180_v51 = vpop.f32.mrb[18].mxu0 }
 0x3d7   : > { %v1389_v36 = vadd.f32 %v2180_v51, %v2791_v26  ;;  %v1377_v41 = vpop.f32.mrb[19].mxu0 }
 0x3d8   : > { %v1388_v42 = vadd.f32 %v2791_v26, %v1377_v41 }
 0x3d9   : > { %1768 = vrot.lane.b32.xlu0 %v1389_v36, %s2418_s20 }
 0x3da   : > { %1766 = vrot.lane.b32.xlu1 %v1388_v42, %s2418_s20 }
 0x3eb   : > { %v2205_v3 = vpop.f32.mrb[12].mxu1 }
 0x3ec   : > { %v1739_v44 = vadd.f32 %v2205_v3, %v2791_v26  ;;  %v1719_v47 = vpop.f32.mrb[13].mxu1 }
 0x3ed   : > { %v1738_v1 = vadd.f32 %v2791_v26, %v1719_v47 }
 0x3ee   : > { %1780 = vrot.lane.b32.xlu0 %v1739_v44, %s2419_s26 }
 0x3ef   : > { %1778 = vrot.lane.b32.xlu1 %v1738_v1, %s2419_s26  ;;  %v2208_v43 = vpop.f32.mrb[14].mxu1 }
 0x3f0   : > { %v1741_v46 = vadd.f32 %v2208_v43, %v2791_v26  ;;  %v1729_v52 = vpop.f32.mrb[15].mxu1 }
 0x3f1   : > { %v1740_v48 = vadd.f32 %v2791_v26, %v1729_v52 }
 0x3f2   : > { %1784 = vrot.lane.b32.xlu0 %v1741_v46, %s2419_s26 }
 0x3f3   : > { %1782 = vrot.lane.b32.xlu1 %v1740_v48, %s2419_s26 }
 0x447   : > { %v1765_v54 = vpop.permute.xlu0 %1764 }
 0x448   : > { %v1763_v55 = vpop.permute.xlu1 %1762  ;;  %v1796_v8 = vsel %vm1794_vm3, %v1791_v7, %v1765_v54 }
 0x449   : > { %v1795_v61 = vsel %vm1794_vm3, %v1790_v15, %v1763_v55 }
 0x44b   : > { %v1769_v58 = vpop.permute.xlu0 %1768 }
 0x44c   : > { %v1767_v59 = vpop.permute.xlu1 %1766  ;;  %v1798_v13 = vsel %vm1794_vm3, %v1793_v62, %v1769_v58 }
 0x44d   : > { %v1797_v18 = vsel %vm1794_vm3, %v1792_v16, %v1767_v59 }
 0x460   : > { %v1781_v10 = vpop.permute.xlu0 %1780 }
 0x461   : > { %v1801_v5 = vsel %vm1799_vm4, %v1796_v8, %v1781_v10  ;;  %v1779_v9 = vpop.permute.xlu1 %1778 }
 0x462   : > { %1805 = vst [vmem:[%s297_s9 + $0x8] sm:$0xff] %v1801_v5  ;;  %v1800_v21 = vsel %vm1799_vm4, %v1795_v61, %v1779_v9 }
 0x463   : > { %1804 = vst [vmem:[%s297_s9] sm:$0xff] %v1800_v21 }
 0x464   : > { %v1785_v17 = vpop.permute.xlu0 %1784 }
 0x465   : > { %v1803_v11 = vsel %vm1799_vm4, %v1798_v13, %v1785_v17  ;;  %v1783_v19 = vpop.permute.xlu1 %1782 }
 0x466   : > { %1807 = vst [vmem:[%s297_s9 + $0x18] sm:$0xff] %v1803_v11  ;;  %v1802_v0 = vsel %vm1799_vm4, %v1797_v18, %v1783_v19 }
 0x467   : > { %1806 = vst [vmem:[%s297_s9 + $0x10] sm:$0xff] %v1802_v0 }
 0x468   : > { %2365 = shalt.err (!%p2362_p3)
}
 0x469   : > { %s2366_s19 = scalar_lea.hbm %s2841_s13, 512  ;;  %s2370_s28 = scalar_lea.hbm %s2893_s6, 1024 }
 0x46a   : > { %p2367_p4 = scmp.ne.s32.totalorder %s2841_s13, %s2366_s19  ;;  %p2371_p9 = scmp.lt.u32.totalorder %s2841_s13, %s2893_s6 }
 0x46b   : > { %p2372_p10 = scmp.lt.u32.totalorder %s2370_s28, %s2366_s19  ;;  %p2374_p12 = scmp.lt.u32.totalorder %s2366_s19, %s2841_s13 }
 0x46c   : > { %p2368_p7 = pnand %p2367_p4, %p2496_p5 }
 0x46d   : > { %p2373_p11 = por %p2372_p10, %p2371_p9 }
 0x46e   : > { %p2369_p8 = pneg %p2368_p7 }
 0x46f   : > { %p2375_p13 = por %p2374_p12, %p2373_p11 }
 0x471   : > { %p2376_p0 = pnand %p2375_p13, %p2369_p8 }
 0x473   : > { %2379 = shalt.err (!%p2376_p0)
}
 0x474   : > { %s2421_s11 = smov 128   ;;  %s2422_s25 = smov 8  }
 0x475   : > { %2257 = dma.vmem_to_hbm [thread:$0]  (%p2496_p5), %s2834_s10, 512, %s2841_s13, %s2846_s14, %s2421_s11, %s2421_s11, %s2422_s25  }
 0x476 PF: > { %p2263_p1 = scmp.ge.s32.totalorder %s2414_s24, 2  ;;  %s1837_s12 = sand.u32 1, %s2402_s21  }
 0x477   : > { %s1838_s15 = scalar_lea.sflag [#allocation3], %s1837_s12 }
 0x478   : > { %p2260_p2 = pnand %p2263_p1, %p2500_p6 }
 0x47a   : > { %2397 = dma.done.wait (!%p2260_p2), %s1838_s15, 512  }
 0x47b   : > { %2399 = vsyncadd (!%p2260_p2), %s1838_s15, 4294966784  ;;  %p16_p3 = scmp.ge.s32.totalorder %s2483_s27, 4   ;;  %s2896_s21 = smov %s2406_s22 }
 0x47c   : > { %s2897_s22 = smov %s2410_s23  ;;  %s2898_s23 = smov %s2494_s30 }
 0x47d   : > { %s2899_s24 = smov %s2483_s27  ;;  %18 = sbr.rel (!%p16_p3) target bundleno = 3 (0x3), region = 100 }
 0x484   :  { %1843 = vsyncpa [#allocation3], 1 }
 0x485   :  { %1845 = vsyncpa [#allocation3 + $0x1], 1 }

</bundles_post_ra>
